<compile_context>
chip_gen: v5e
topology: v5e:2x2
jax: 0.10.0
libtpu: 0.0.40
codegen_flags: <defaults>
</compile_context>

<pallas_src>
import math
import numpy as np

import jax
import jax.numpy as jnp
from jax.experimental import pallas as pl
from jax.experimental.pallas import tpu as pltpu

WIN = 11
NSIG = 0.1
PAD = (WIN - 1) // 2


def gaussian_kernel_1d(win=WIN, nsig=NSIG):
    """Deterministic 1D Gaussian taps, identical to gkern1D (norm.cdf via erf)."""
    x = np.linspace(-nsig, nsig, win + 1)
    cdf = np.array([0.5 * (1.0 + math.erf(v / math.sqrt(2.0))) for v in x])
    k = np.diff(cdf)
    return (k / k.sum()).astype(np.float32)


K1D = gaussian_kernel_1d()  # (11,) static numpy constants baked into the kernel


def _gauss_sep_kernel(x_ref, o_ref, y_scr):
    """One (batch, W-tile) grid step.

    x_ref: (1, WIN, H, WT)  raw (unpadded) input tile, all 11 channels
    o_ref: (1, 1,  H, WT)   output core tile (W edge columns handled in wrapper)
    y_scr: (H + 2*PAD, WT)  f32 scratch: channel-contracted map with zero H halo
    """
    H = o_ref.shape[2]
    WT = o_ref.shape[3]

    # Zero the 5-row top/bottom halos (tiny masked stores; correct on every
    # TensorCore and every grid step, no cross-step assumptions).
    y_scr[0:PAD, :] = jnp.zeros((PAD, WT), jnp.float32)
    y_scr[PAD + H:PAD + H + PAD, :] = jnp.zeros((PAD, WT), jnp.float32)

    # Input-channel contraction with constant taps (VPU).  Per-channel upcast so
    # a bf16 input only pays bf16 DMA bytes but accumulates in f32.
    y = x_ref[0, 0].astype(jnp.float32) * float(K1D[0])
    for c in range(1, WIN):                    # static unroll, taps are constants
        y = y + float(K1D[c]) * x_ref[0, c].astype(jnp.float32)
    y_scr[PAD:PAD + H, :] = y

    # Vertical 11-tap filter along H; implicit zero H-padding comes from the
    # scratch halo.  Shifted windows are read from VMEM (vld slots), keeping the
    # VALU as the only busy compute slot.
    o_ref[0, 0, :, :] = float(K1D[0]) * y_scr[0:H, :]
    for kh in range(1, WIN):                   # static unroll
        o_ref[0, 0, :, :] += float(K1D[kh]) * y_scr[kh:kh + H, :]


def _pick_w_tile(h, w, in_itemsize):
    """Largest lane-dense (multiple-of-128) W tile whose double-buffered
    footprint fits comfortably in VMEM on every generation (v7x: 64 MiB)."""
    budget = 24 * 1024 * 1024
    divisors = [wt for wt in (2048, 1024, 512, 256, 128) if w % wt == 0]
    for wt in divisors:
        in_bytes = 2 * WIN * h * wt * in_itemsize   # double-buffered input tile
        out_bytes = 2 * h * wt * 4                  # double-buffered output tile
        scr_bytes = (h + 2 * PAD) * wt * 4          # scratch (single copy)
        if in_bytes + out_bytes + scr_bytes <= budget:
            return wt
    if divisors:
        return divisors[-1]                         # 128: smallest lane-dense tile
    return w   # small / ragged W: single full-width tile (block == full dim is legal)


def gaussian_kernel_2d_forward(x):
    """Equivalent of GaussianKernel_2D(win=11, nsig=0.1).forward(x); x is NCHW."""
    n, c, h, w = x.shape
    assert c == WIN, "conv weight is (1, win, win, 1): input must have win channels"

    wt = _pick_w_tile(h, w, x.dtype.itemsize)
    grid = (n, w // wt)

    core = pl.pallas_call(
        _gauss_sep_kernel,
        out_shape=jax.ShapeDtypeStruct((n, 1, h, w), jnp.float32),
        grid=grid,
        in_specs=[pl.BlockSpec((1, WIN, h, wt), lambda b, j: (b, 0, 0, j))],
        out_specs=pl.BlockSpec((1, 1, h, wt), lambda b, j: (b, 0, 0, j)),
        scratch_shapes=[pltpu.VMEM((h + 2 * PAD, wt), jnp.float32)],
        compiler_params=pltpu.CompilerParams(
            dimension_semantics=("parallel", "parallel"),
            vmem_limit_bytes=48 * 1024 * 1024,
        ),
    )(x)

    # kW == 1 with zero W-padding => the first/last PAD output columns are exact
    # zeros; pad the cheap 1-channel output instead of the 11-channel input.
    return jnp.pad(core, ((0, 0), (0, 0), (0, 0), (PAD, PAD)))


if __name__ == "__main__":
    key = jax.random.PRNGKey(0)
    N, C, H, W = 2, WIN, 16, 16            # channels must equal win = 11
    x = jax.random.normal(key, (N, C, H, W), dtype=jnp.float32)

    out = jax.block_until_ready(gaussian_kernel_2d_forward(x))
    assert out.shape == (N, 1, H, W + WIN - 1)

    # Reference: same conv as F.conv2d(x, kernel, padding=5)
    w4d = jnp.asarray(np.outer(K1D, K1D)[None, :, :, None], jnp.float32)  # OIHW (1,11,11,1)
    ref = jax.lax.conv_general_dilated(
        x, w4d, window_strides=(1, 1), padding=((PAD, PAD), (PAD, PAD)),
        dimension_numbers=("NCHW", "OIHW", "NCHW"))
    np.testing.assert_allclose(np.asarray(out), np.asarray(ref), rtol=1e-5, atol=1e-5)

    print("KERNEL_OK")
</pallas_src>

<mosaic_0001>
module attributes {stable_mosaic.version = 11 : i64} {
  func.func @_gauss_sep_kernel(%arg0: i32, %arg1: i32, %arg2: memref<1x11x16x16xf32, #tpu.memory_space<vmem>>, %arg3: memref<1x1x16x16xf32, #tpu.memory_space<vmem>>, %arg4: memref<26x16xf32, #tpu.memory_space<vmem>>) attributes {dimension_semantics = [#tpu.dimension_semantics<parallel>, #tpu.dimension_semantics<parallel>], iteration_bounds = array<i64: 2, 1>, scalar_prefetch = 0 : i64, scratch_operands = 1 : i64, tpu.core_type = #tpu.core_type<tc>, window_params = [{transform_indices = @transform_0, window_bounds = array<i64: 1, 11, 16, 16>}, {transform_indices = @transform_1, window_bounds = array<i64: 1, 1, 16, 16>}]} {
    %cst = arith.constant 0.000000e+00 : f32
    %0 = vector.broadcast %cst : f32 to vector<5x16xf32>
    %c0 = arith.constant 0 : index
    %c0_0 = arith.constant 0 : index
    %1 = vector.load %arg4[%c0, %c0_0] : memref<26x16xf32, #tpu.memory_space<vmem>>, vector<5x16xf32>
    tpu.vector_store %arg4[%c0, %c0_0], %0 {strides = array<i32>} : memref<26x16xf32, #tpu.memory_space<vmem>>, vector<5x16xf32>,
    %cst_1 = arith.constant 0.000000e+00 : f32
    %2 = vector.broadcast %cst_1 : f32 to vector<5x16xf32>
    %c21 = arith.constant 21 : index
    %c0_2 = arith.constant 0 : index
    %3 = vector.load %arg4[%c21, %c0_2] : memref<26x16xf32, #tpu.memory_space<vmem>>, vector<5x16xf32>
    tpu.vector_store %arg4[%c21, %c0_2], %2 {strides = array<i32>} : memref<26x16xf32, #tpu.memory_space<vmem>>, vector<5x16xf32>,
    %c0_3 = arith.constant 0 : index
    %c0_4 = arith.constant 0 : index
    %c0_5 = arith.constant 0 : index
    %c0_6 = arith.constant 0 : index
    %4 = vector.load %arg2[%c0_3, %c0_4, %c0_5, %c0_6] : memref<1x11x16x16xf32, #tpu.memory_space<vmem>>, vector<1x1x16x16xf32>
    %5 = vector.shape_cast %4 : vector<1x1x16x16xf32> to vector<16x16xf32>
    %cst_7 = arith.constant 0.0906838849 : f32
    %6 = vector.broadcast %cst_7 : f32 to vector<16x16xf32>
    %7 = arith.mulf %5, %6 : vector<16x16xf32>
    %c0_8 = arith.constant 0 : index
    %c1 = arith.constant 1 : index
    %c0_9 = arith.constant 0 : index
    %c0_10 = arith.constant 0 : index
    %8 = vector.load %arg2[%c0_8, %c1, %c0_9, %c0_10] : memref<1x11x16x16xf32, #tpu.memory_space<vmem>>, vector<1x1x16x16xf32>
    %9 = vector.shape_cast %8 : vector<1x1x16x16xf32> to vector<16x16xf32>
    %cst_11 = arith.constant 0.0908188819 : f32
    %10 = vector.broadcast %cst_11 : f32 to vector<16x16xf32>
    %11 = arith.mulf %10, %9 : vector<16x16xf32>
    %12 = arith.addf %7, %11 : vector<16x16xf32>
    %c0_12 = arith.constant 0 : index
    %c2 = arith.constant 2 : index
    %c0_13 = arith.constant 0 : index
    %c0_14 = arith.constant 0 : index
    %13 = vector.load %arg2[%c0_12, %c2, %c0_13, %c0_14] : memref<1x11x16x16xf32, #tpu.memory_space<vmem>>, vector<1x1x16x16xf32>
    %14 = vector.shape_cast %13 : vector<1x1x16x16xf32> to vector<16x16xf32>
    %cst_15 = arith.constant 0.0909240245 : f32
    %15 = vector.broadcast %cst_15 : f32 to vector<16x16xf32>
    %16 = arith.mulf %15, %14 : vector<16x16xf32>
    %17 = arith.addf %12, %16 : vector<16x16xf32>
    %c0_16 = arith.constant 0 : index
    %c3 = arith.constant 3 : index
    %c0_17 = arith.constant 0 : index
    %c0_18 = arith.constant 0 : index
    %18 = vector.load %arg2[%c0_16, %c3, %c0_17, %c0_18] : memref<1x11x16x16xf32, #tpu.memory_space<vmem>>, vector<1x1x16x16xf32>
    %19 = vector.shape_cast %18 : vector<1x1x16x16xf32> to vector<16x16xf32>
    %cst_19 = arith.constant 0.0909991934 : f32
    %20 = vector.broadcast %cst_19 : f32 to vector<16x16xf32>
    %21 = arith.mulf %20, %19 : vector<16x16xf32>
    %22 = arith.addf %17, %21 : vector<16x16xf32>
    %c0_20 = arith.constant 0 : index
    %c4 = arith.constant 4 : index
    %c0_21 = arith.constant 0 : index
    %c0_22 = arith.constant 0 : index
    %23 = vector.load %arg2[%c0_20, %c4, %c0_21, %c0_22] : memref<1x11x16x16xf32, #tpu.memory_space<vmem>>, vector<1x1x16x16xf32>
    %24 = vector.shape_cast %23 : vector<1x1x16x16xf32> to vector<16x16xf32>
    %cst_23 = arith.constant 0.0910443291 : f32
    %25 = vector.broadcast %cst_23 : f32 to vector<16x16xf32>
    %26 = arith.mulf %25, %24 : vector<16x16xf32>
    %27 = arith.addf %22, %26 : vector<16x16xf32>
    %c0_24 = arith.constant 0 : index
    %c5 = arith.constant 5 : index
    %c0_25 = arith.constant 0 : index
    %c0_26 = arith.constant 0 : index
    %28 = vector.load %arg2[%c0_24, %c5, %c0_25, %c0_26] : memref<1x11x16x16xf32, #tpu.memory_space<vmem>>, vector<1x1x16x16xf32>
    %29 = vector.shape_cast %28 : vector<1x1x16x16xf32> to vector<16x16xf32>
    %cst_27 = arith.constant 0.0910593792 : f32
    %30 = vector.broadcast %cst_27 : f32 to vector<16x16xf32>
    %31 = arith.mulf %30, %29 : vector<16x16xf32>
    %32 = arith.addf %27, %31 : vector<16x16xf32>
    %c0_28 = arith.constant 0 : index
    %c6 = arith.constant 6 : index
    %c0_29 = arith.constant 0 : index
    %c0_30 = arith.constant 0 : index
    %33 = vector.load %arg2[%c0_28, %c6, %c0_29, %c0_30] : memref<1x11x16x16xf32, #tpu.memory_space<vmem>>, vector<1x1x16x16xf32>
    %34 = vector.shape_cast %33 : vector<1x1x16x16xf32> to vector<16x16xf32>
    %cst_31 = arith.constant 0.0910443291 : f32
    %35 = vector.broadcast %cst_31 : f32 to vector<16x16xf32>
    %36 = arith.mulf %35, %34 : vector<16x16xf32>
    %37 = arith.addf %32, %36 : vector<16x16xf32>
    %c0_32 = arith.constant 0 : index
    %c7 = arith.constant 7 : index
    %c0_33 = arith.constant 0 : index
    %c0_34 = arith.constant 0 : index
    %38 = vector.load %arg2[%c0_32, %c7, %c0_33, %c0_34] : memref<1x11x16x16xf32, #tpu.memory_space<vmem>>, vector<1x1x16x16xf32>
    %39 = vector.shape_cast %38 : vector<1x1x16x16xf32> to vector<16x16xf32>
    %cst_35 = arith.constant 0.0909991934 : f32
    %40 = vector.broadcast %cst_35 : f32 to vector<16x16xf32>
    %41 = arith.mulf %40, %39 : vector<16x16xf32>
    %42 = arith.addf %37, %41 : vector<16x16xf32>
    %c0_36 = arith.constant 0 : index
    %c8 = arith.constant 8 : index
    %c0_37 = arith.constant 0 : index
    %c0_38 = arith.constant 0 : index
    %43 = vector.load %arg2[%c0_36, %c8, %c0_37, %c0_38] : memref<1x11x16x16xf32, #tpu.memory_space<vmem>>, vector<1x1x16x16xf32>
    %44 = vector.shape_cast %43 : vector<1x1x16x16xf32> to vector<16x16xf32>
    %cst_39 = arith.constant 0.0909240245 : f32
    %45 = vector.broadcast %cst_39 : f32 to vector<16x16xf32>
    %46 = arith.mulf %45, %44 : vector<16x16xf32>
    %47 = arith.addf %42, %46 : vector<16x16xf32>
    %c0_40 = arith.constant 0 : index
    %c9 = arith.constant 9 : index
    %c0_41 = arith.constant 0 : index
    %c0_42 = arith.constant 0 : index
    %48 = vector.load %arg2[%c0_40, %c9, %c0_41, %c0_42] : memref<1x11x16x16xf32, #tpu.memory_space<vmem>>, vector<1x1x16x16xf32>
    %49 = vector.shape_cast %48 : vector<1x1x16x16xf32> to vector<16x16xf32>
    %cst_43 = arith.constant 0.0908188819 : f32
    %50 = vector.broadcast %cst_43 : f32 to vector<16x16xf32>
    %51 = arith.mulf %50, %49 : vector<16x16xf32>
    %52 = arith.addf %47, %51 : vector<16x16xf32>
    %c0_44 = arith.constant 0 : index
    %c10 = arith.constant 10 : index
    %c0_45 = arith.constant 0 : index
    %c0_46 = arith.constant 0 : index
    %53 = vector.load %arg2[%c0_44, %c10, %c0_45, %c0_46] : memref<1x11x16x16xf32, #tpu.memory_space<vmem>>, vector<1x1x16x16xf32>
    %54 = vector.shape_cast %53 : vector<1x1x16x16xf32> to vector<16x16xf32>
    %cst_47 = arith.constant 0.0906838849 : f32
    %55 = vector.broadcast %cst_47 : f32 to vector<16x16xf32>
    %56 = arith.mulf %55, %54 : vector<16x16xf32>
    %57 = arith.addf %52, %56 : vector<16x16xf32>
    %c5_48 = arith.constant 5 : index
    %c0_49 = arith.constant 0 : index
    %58 = vector.load %arg4[%c5_48, %c0_49] : memref<26x16xf32, #tpu.memory_space<vmem>>, vector<16x16xf32>
    tpu.vector_store %arg4[%c5_48, %c0_49], %57 {strides = array<i32>} : memref<26x16xf32, #tpu.memory_space<vmem>>, vector<16x16xf32>,
    %c0_50 = arith.constant 0 : index
    %c0_51 = arith.constant 0 : index
    %59 = vector.load %arg4[%c0_50, %c0_51] : memref<26x16xf32, #tpu.memory_space<vmem>>, vector<16x16xf32>
    %cst_52 = arith.constant 0.0906838849 : f32
    %60 = vector.broadcast %cst_52 : f32 to vector<16x16xf32>
    %61 = arith.mulf %60, %59 : vector<16x16xf32>
    %c0_53 = arith.constant 0 : index
    %c0_54 = arith.constant 0 : index
    %c0_55 = arith.constant 0 : index
    %c0_56 = arith.constant 0 : index
    %62 = vector.load %arg3[%c0_53, %c0_54, %c0_55, %c0_56] : memref<1x1x16x16xf32, #tpu.memory_space<vmem>>, vector<1x1x16x16xf32>
    %63 = vector.shape_cast %62 : vector<1x1x16x16xf32> to vector<16x16xf32>
    %64 = vector.shape_cast %61 : vector<16x16xf32> to vector<1x1x16x16xf32>
    tpu.vector_store %arg3[%c0_53, %c0_54, %c0_55, %c0_56], %64 {strides = array<i32>} : memref<1x1x16x16xf32, #tpu.memory_space<vmem>>, vector<1x1x16x16xf32>,
    %c0_57 = arith.constant 0 : index
    %c0_58 = arith.constant 0 : index
    %c0_59 = arith.constant 0 : index
    %c0_60 = arith.constant 0 : index
    %65 = vector.load %arg3[%c0_57, %c0_58, %c0_59, %c0_60] : memref<1x1x16x16xf32, #tpu.memory_space<vmem>>, vector<1x1x16x16xf32>
    %66 = vector.shape_cast %65 : vector<1x1x16x16xf32> to vector<16x16xf32>
    %c1_61 = arith.constant 1 : index
    %c0_62 = arith.constant 0 : index
    %67 = vector.load %arg4[%c1_61, %c0_62] : memref<26x16xf32, #tpu.memory_space<vmem>>, vector<16x16xf32>
    %cst_63 = arith.constant 0.0908188819 : f32
    %68 = vector.broadcast %cst_63 : f32 to vector<16x16xf32>
    %69 = arith.mulf %68, %67 : vector<16x16xf32>
    %70 = arith.addf %66, %69 : vector<16x16xf32>
    %c0_64 = arith.constant 0 : index
    %c0_65 = arith.constant 0 : index
    %c0_66 = arith.constant 0 : index
    %c0_67 = arith.constant 0 : index
    %71 = vector.load %arg3[%c0_64, %c0_65, %c0_66, %c0_67] : memref<1x1x16x16xf32, #tpu.memory_space<vmem>>, vector<1x1x16x16xf32>
    %72 = vector.shape_cast %71 : vector<1x1x16x16xf32> to vector<16x16xf32>
    %73 = vector.shape_cast %70 : vector<16x16xf32> to vector<1x1x16x16xf32>
    tpu.vector_store %arg3[%c0_64, %c0_65, %c0_66, %c0_67], %73 {strides = array<i32>} : memref<1x1x16x16xf32, #tpu.memory_space<vmem>>, vector<1x1x16x16xf32>,
    %c0_68 = arith.constant 0 : index
    %c0_69 = arith.constant 0 : index
    %c0_70 = arith.constant 0 : index
    %c0_71 = arith.constant 0 : index
    %74 = vector.load %arg3[%c0_68, %c0_69, %c0_70, %c0_71] : memref<1x1x16x16xf32, #tpu.memory_space<vmem>>, vector<1x1x16x16xf32>
    %75 = vector.shape_cast %74 : vector<1x1x16x16xf32> to vector<16x16xf32>
    %c2_72 = arith.constant 2 : index
    %c0_73 = arith.constant 0 : index
    %76 = vector.load %arg4[%c2_72, %c0_73] : memref<26x16xf32, #tpu.memory_space<vmem>>, vector<16x16xf32>
    %cst_74 = arith.constant 0.0909240245 : f32
    %77 = vector.broadcast %cst_74 : f32 to vector<16x16xf32>
    %78 = arith.mulf %77, %76 : vector<16x16xf32>
    %79 = arith.addf %75, %78 : vector<16x16xf32>
    %c0_75 = arith.constant 0 : index
    %c0_76 = arith.constant 0 : index
    %c0_77 = arith.constant 0 : index
    %c0_78 = arith.constant 0 : index
    %80 = vector.load %arg3[%c0_75, %c0_76, %c0_77, %c0_78] : memref<1x1x16x16xf32, #tpu.memory_space<vmem>>, vector<1x1x16x16xf32>
    %81 = vector.shape_cast %80 : vector<1x1x16x16xf32> to vector<16x16xf32>
    %82 = vector.shape_cast %79 : vector<16x16xf32> to vector<1x1x16x16xf32>
    tpu.vector_store %arg3[%c0_75, %c0_76, %c0_77, %c0_78], %82 {strides = array<i32>} : memref<1x1x16x16xf32, #tpu.memory_space<vmem>>, vector<1x1x16x16xf32>,
    %c0_79 = arith.constant 0 : index
    %c0_80 = arith.constant 0 : index
    %c0_81 = arith.constant 0 : index
    %c0_82 = arith.constant 0 : index
    %83 = vector.load %arg3[%c0_79, %c0_80, %c0_81, %c0_82] : memref<1x1x16x16xf32, #tpu.memory_space<vmem>>, vector<1x1x16x16xf32>
    %84 = vector.shape_cast %83 : vector<1x1x16x16xf32> to vector<16x16xf32>
    %c3_83 = arith.constant 3 : index
    %c0_84 = arith.constant 0 : index
    %85 = vector.load %arg4[%c3_83, %c0_84] : memref<26x16xf32, #tpu.memory_space<vmem>>, vector<16x16xf32>
    %cst_85 = arith.constant 0.0909991934 : f32
    %86 = vector.broadcast %cst_85 : f32 to vector<16x16xf32>
    %87 = arith.mulf %86, %85 : vector<16x16xf32>
    %88 = arith.addf %84, %87 : vector<16x16xf32>
    %c0_86 = arith.constant 0 : index
    %c0_87 = arith.constant 0 : index
    %c0_88 = arith.constant 0 : index
    %c0_89 = arith.constant 0 : index
    %89 = vector.load %arg3[%c0_86, %c0_87, %c0_88, %c0_89] : memref<1x1x16x16xf32, #tpu.memory_space<vmem>>, vector<1x1x16x16xf32>
    %90 = vector.shape_cast %89 : vector<1x1x16x16xf32> to vector<16x16xf32>
    %91 = vector.shape_cast %88 : vector<16x16xf32> to vector<1x1x16x16xf32>
    tpu.vector_store %arg3[%c0_86, %c0_87, %c0_88, %c0_89], %91 {strides = array<i32>} : memref<1x1x16x16xf32, #tpu.memory_space<vmem>>, vector<1x1x16x16xf32>,
    %c0_90 = arith.constant 0 : index
    %c0_91 = arith.constant 0 : index
    %c0_92 = arith.constant 0 : index
    %c0_93 = arith.constant 0 : index
    %92 = vector.load %arg3[%c0_90, %c0_91, %c0_92, %c0_93] : memref<1x1x16x16xf32, #tpu.memory_space<vmem>>, vector<1x1x16x16xf32>
    %93 = vector.shape_cast %92 : vector<1x1x16x16xf32> to vector<16x16xf32>
    %c4_94 = arith.constant 4 : index
    %c0_95 = arith.constant 0 : index
    %94 = vector.load %arg4[%c4_94, %c0_95] : memref<26x16xf32, #tpu.memory_space<vmem>>, vector<16x16xf32>
    %cst_96 = arith.constant 0.0910443291 : f32
    %95 = vector.broadcast %cst_96 : f32 to vector<16x16xf32>
    %96 = arith.mulf %95, %94 : vector<16x16xf32>
    %97 = arith.addf %93, %96 : vector<16x16xf32>
    %c0_97 = arith.constant 0 : index
    %c0_98 = arith.constant 0 : index
    %c0_99 = arith.constant 0 : index
    %c0_100 = arith.constant 0 : index
    %98 = vector.load %arg3[%c0_97, %c0_98, %c0_99, %c0_100] : memref<1x1x16x16xf32, #tpu.memory_space<vmem>>, vector<1x1x16x16xf32>
    %99 = vector.shape_cast %98 : vector<1x1x16x16xf32> to vector<16x16xf32>
    %100 = vector.shape_cast %97 : vector<16x16xf32> to vector<1x1x16x16xf32>
    tpu.vector_store %arg3[%c0_97, %c0_98, %c0_99, %c0_100], %100 {strides = array<i32>} : memref<1x1x16x16xf32, #tpu.memory_space<vmem>>, vector<1x1x16x16xf32>,
    %c0_101 = arith.constant 0 : index
    %c0_102 = arith.constant 0 : index
    %c0_103 = arith.constant 0 : index
    %c0_104 = arith.constant 0 : index
    %101 = vector.load %arg3[%c0_101, %c0_102, %c0_103, %c0_104] : memref<1x1x16x16xf32, #tpu.memory_space<vmem>>, vector<1x1x16x16xf32>
    %102 = vector.shape_cast %101 : vector<1x1x16x16xf32> to vector<16x16xf32>
    %c5_105 = arith.constant 5 : index
    %c0_106 = arith.constant 0 : index
    %103 = vector.load %arg4[%c5_105, %c0_106] : memref<26x16xf32, #tpu.memory_space<vmem>>, vector<16x16xf32>
    %cst_107 = arith.constant 0.0910593792 : f32
    %104 = vector.broadcast %cst_107 : f32 to vector<16x16xf32>
    %105 = arith.mulf %104, %103 : vector<16x16xf32>
    %106 = arith.addf %102, %105 : vector<16x16xf32>
    %c0_108 = arith.constant 0 : index
    %c0_109 = arith.constant 0 : index
    %c0_110 = arith.constant 0 : index
    %c0_111 = arith.constant 0 : index
    %107 = vector.load %arg3[%c0_108, %c0_109, %c0_110, %c0_111] : memref<1x1x16x16xf32, #tpu.memory_space<vmem>>, vector<1x1x16x16xf32>
    %108 = vector.shape_cast %107 : vector<1x1x16x16xf32> to vector<16x16xf32>
    %109 = vector.shape_cast %106 : vector<16x16xf32> to vector<1x1x16x16xf32>
    tpu.vector_store %arg3[%c0_108, %c0_109, %c0_110, %c0_111], %109 {strides = array<i32>} : memref<1x1x16x16xf32, #tpu.memory_space<vmem>>, vector<1x1x16x16xf32>,
    %c0_112 = arith.constant 0 : index
    %c0_113 = arith.constant 0 : index
    %c0_114 = arith.constant 0 : index
    %c0_115 = arith.constant 0 : index
    %110 = vector.load %arg3[%c0_112, %c0_113, %c0_114, %c0_115] : memref<1x1x16x16xf32, #tpu.memory_space<vmem>>, vector<1x1x16x16xf32>
    %111 = vector.shape_cast %110 : vector<1x1x16x16xf32> to vector<16x16xf32>
    %c6_116 = arith.constant 6 : index
    %c0_117 = arith.constant 0 : index
    %112 = vector.load %arg4[%c6_116, %c0_117] : memref<26x16xf32, #tpu.memory_space<vmem>>, vector<16x16xf32>
    %cst_118 = arith.constant 0.0910443291 : f32
    %113 = vector.broadcast %cst_118 : f32 to vector<16x16xf32>
    %114 = arith.mulf %113, %112 : vector<16x16xf32>
    %115 = arith.addf %111, %114 : vector<16x16xf32>
    %c0_119 = arith.constant 0 : index
    %c0_120 = arith.constant 0 : index
    %c0_121 = arith.constant 0 : index
    %c0_122 = arith.constant 0 : index
    %116 = vector.load %arg3[%c0_119, %c0_120, %c0_121, %c0_122] : memref<1x1x16x16xf32, #tpu.memory_space<vmem>>, vector<1x1x16x16xf32>
    %117 = vector.shape_cast %116 : vector<1x1x16x16xf32> to vector<16x16xf32>
    %118 = vector.shape_cast %115 : vector<16x16xf32> to vector<1x1x16x16xf32>
    tpu.vector_store %arg3[%c0_119, %c0_120, %c0_121, %c0_122], %118 {strides = array<i32>} : memref<1x1x16x16xf32, #tpu.memory_space<vmem>>, vector<1x1x16x16xf32>,
    %c0_123 = arith.constant 0 : index
    %c0_124 = arith.constant 0 : index
    %c0_125 = arith.constant 0 : index
    %c0_126 = arith.constant 0 : index
    %119 = vector.load %arg3[%c0_123, %c0_124, %c0_125, %c0_126] : memref<1x1x16x16xf32, #tpu.memory_space<vmem>>, vector<1x1x16x16xf32>
    %120 = vector.shape_cast %119 : vector<1x1x16x16xf32> to vector<16x16xf32>
    %c7_127 = arith.constant 7 : index
    %c0_128 = arith.constant 0 : index
    %121 = vector.load %arg4[%c7_127, %c0_128] : memref<26x16xf32, #tpu.memory_space<vmem>>, vector<16x16xf32>
    %cst_129 = arith.constant 0.0909991934 : f32
    %122 = vector.broadcast %cst_129 : f32 to vector<16x16xf32>
    %123 = arith.mulf %122, %121 : vector<16x16xf32>
    %124 = arith.addf %120, %123 : vector<16x16xf32>
    %c0_130 = arith.constant 0 : index
    %c0_131 = arith.constant 0 : index
    %c0_132 = arith.constant 0 : index
    %c0_133 = arith.constant 0 : index
    %125 = vector.load %arg3[%c0_130, %c0_131, %c0_132, %c0_133] : memref<1x1x16x16xf32, #tpu.memory_space<vmem>>, vector<1x1x16x16xf32>
    %126 = vector.shape_cast %125 : vector<1x1x16x16xf32> to vector<16x16xf32>
    %127 = vector.shape_cast %124 : vector<16x16xf32> to vector<1x1x16x16xf32>
    tpu.vector_store %arg3[%c0_130, %c0_131, %c0_132, %c0_133], %127 {strides = array<i32>} : memref<1x1x16x16xf32, #tpu.memory_space<vmem>>, vector<1x1x16x16xf32>,
    %c0_134 = arith.constant 0 : index
    %c0_135 = arith.constant 0 : index
    %c0_136 = arith.constant 0 : index
    %c0_137 = arith.constant 0 : index
    %128 = vector.load %arg3[%c0_134, %c0_135, %c0_136, %c0_137] : memref<1x1x16x16xf32, #tpu.memory_space<vmem>>, vector<1x1x16x16xf32>
    %129 = vector.shape_cast %128 : vector<1x1x16x16xf32> to vector<16x16xf32>
    %c8_138 = arith.constant 8 : index
    %c0_139 = arith.constant 0 : index
    %130 = vector.load %arg4[%c8_138, %c0_139] : memref<26x16xf32, #tpu.memory_space<vmem>>, vector<16x16xf32>
    %cst_140 = arith.constant 0.0909240245 : f32
    %131 = vector.broadcast %cst_140 : f32 to vector<16x16xf32>
    %132 = arith.mulf %131, %130 : vector<16x16xf32>
    %133 = arith.addf %129, %132 : vector<16x16xf32>
    %c0_141 = arith.constant 0 : index
    %c0_142 = arith.constant 0 : index
    %c0_143 = arith.constant 0 : index
    %c0_144 = arith.constant 0 : index
    %134 = vector.load %arg3[%c0_141, %c0_142, %c0_143, %c0_144] : memref<1x1x16x16xf32, #tpu.memory_space<vmem>>, vector<1x1x16x16xf32>
    %135 = vector.shape_cast %134 : vector<1x1x16x16xf32> to vector<16x16xf32>
    %136 = vector.shape_cast %133 : vector<16x16xf32> to vector<1x1x16x16xf32>
    tpu.vector_store %arg3[%c0_141, %c0_142, %c0_143, %c0_144], %136 {strides = array<i32>} : memref<1x1x16x16xf32, #tpu.memory_space<vmem>>, vector<1x1x16x16xf32>,
    %c0_145 = arith.constant 0 : index
    %c0_146 = arith.constant 0 : index
    %c0_147 = arith.constant 0 : index
    %c0_148 = arith.constant 0 : index
    %137 = vector.load %arg3[%c0_145, %c0_146, %c0_147, %c0_148] : memref<1x1x16x16xf32, #tpu.memory_space<vmem>>, vector<1x1x16x16xf32>
    %138 = vector.shape_cast %137 : vector<1x1x16x16xf32> to vector<16x16xf32>
    %c9_149 = arith.constant 9 : index
    %c0_150 = arith.constant 0 : index
    %139 = vector.load %arg4[%c9_149, %c0_150] : memref<26x16xf32, #tpu.memory_space<vmem>>, vector<16x16xf32>
    %cst_151 = arith.constant 0.0908188819 : f32
    %140 = vector.broadcast %cst_151 : f32 to vector<16x16xf32>
    %141 = arith.mulf %140, %139 : vector<16x16xf32>
    %142 = arith.addf %138, %141 : vector<16x16xf32>
    %c0_152 = arith.constant 0 : index
    %c0_153 = arith.constant 0 : index
    %c0_154 = arith.constant 0 : index
    %c0_155 = arith.constant 0 : index
    %143 = vector.load %arg3[%c0_152, %c0_153, %c0_154, %c0_155] : memref<1x1x16x16xf32, #tpu.memory_space<vmem>>, vector<1x1x16x16xf32>
    %144 = vector.shape_cast %143 : vector<1x1x16x16xf32> to vector<16x16xf32>
    %145 = vector.shape_cast %142 : vector<16x16xf32> to vector<1x1x16x16xf32>
    tpu.vector_store %arg3[%c0_152, %c0_153, %c0_154, %c0_155], %145 {strides = array<i32>} : memref<1x1x16x16xf32, #tpu.memory_space<vmem>>, vector<1x1x16x16xf32>,
    %c0_156 = arith.constant 0 : index
    %c0_157 = arith.constant 0 : index
    %c0_158 = arith.constant 0 : index
    %c0_159 = arith.constant 0 : index
    %146 = vector.load %arg3[%c0_156, %c0_157, %c0_158, %c0_159] : memref<1x1x16x16xf32, #tpu.memory_space<vmem>>, vector<1x1x16x16xf32>
    %147 = vector.shape_cast %146 : vector<1x1x16x16xf32> to vector<16x16xf32>
    %c10_160 = arith.constant 10 : index
    %c0_161 = arith.constant 0 : index
    %148 = vector.load %arg4[%c10_160, %c0_161] : memref<26x16xf32, #tpu.memory_space<vmem>>, vector<16x16xf32>
    %cst_162 = arith.constant 0.0906838849 : f32
    %149 = vector.broadcast %cst_162 : f32 to vector<16x16xf32>
    %150 = arith.mulf %149, %148 : vector<16x16xf32>
    %151 = arith.addf %147, %150 : vector<16x16xf32>
    %c0_163 = arith.constant 0 : index
    %c0_164 = arith.constant 0 : index
    %c0_165 = arith.constant 0 : index
    %c0_166 = arith.constant 0 : index
    %152 = vector.load %arg3[%c0_163, %c0_164, %c0_165, %c0_166] : memref<1x1x16x16xf32, #tpu.memory_space<vmem>>, vector<1x1x16x16xf32>
    %153 = vector.shape_cast %152 : vector<1x1x16x16xf32> to vector<16x16xf32>
    %154 = vector.shape_cast %151 : vector<16x16xf32> to vector<1x1x16x16xf32>
    tpu.vector_store %arg3[%c0_163, %c0_164, %c0_165, %c0_166], %154 {strides = array<i32>} : memref<1x1x16x16xf32, #tpu.memory_space<vmem>>, vector<1x1x16x16xf32>,
    return
  }
  func.func @transform_0(%arg0: i32, %arg1: i32) -> (i32, i32, i32, i32) {
    %c0_i32 = arith.constant 0 : i32
    %c0_i32_0 = arith.constant 0 : i32
    %c0_i32_1 = arith.constant 0 : i32
    return %arg0, %c0_i32, %c0_i32_0, %arg1 : i32, i32, i32, i32
  }
  func.func @transform_1(%arg0: i32, %arg1: i32) -> (i32, i32, i32, i32) {
    %c0_i32 = arith.constant 0 : i32
    %c0_i32_0 = arith.constant 0 : i32
    %c0_i32_1 = arith.constant 0 : i32
    return %arg0, %c0_i32, %c0_i32_0, %arg1 : i32, i32, i32, i32
  }
}

</mosaic_0001>

<bundles_post_ra>
// kernel: tpu_custom_call.1
= control target key start
LH: loop header
LB: loop body
LE: loop exit
PB: predicated region body
PF: predicated region fallthrough
CT: control target
= control target key end

     0   :  { %6 = vsyncpa [#allocation4], 0  ;;  %s900_s0 = inlined_call_operand.hbm [shape: f32[2,11,16,16], index: 0, kind: input, shape index: {}]   ;;  %s901_s1 = inlined_call_operand.hbm [shape: f32[2,1,16,16], index: 1, kind: output, shape index: {}]  }
   0x1   :  { %8 = vsyncpa [#allocation4 + $0x1], 0 }
   0x2   :  { %9 = vsyncpa [#allocation5], 0 }
   0x3   :  { %11 = vsyncpa [#allocation5 + $0x1], 0  ;;  %s674_s6 = smov 0   ;;  %s676_s7 = smov 0  }
   0x4   :  { %s678_s8 = smov 0   ;;  %s680_s9 = smov 0  }
   0x5   :  { %s682_s10 = smov 0   ;;  %s684_s11 = smov 0  }
   0x6 LB: > { %s442_s12 = sadd.s32 4294967295, %s657_s11   ;;  %s443_s13 = sadd.s32 4294967294, %s657_s11   ;;  %s657_s11 = sphi %s684_s11, %s17_s11   ;;  %s653_s10 = sphi %s682_s10, %s910_s10   ;;  %s649_s9 = sphi %s680_s9, %s909_s9   ;;  %s645_s8 = sphi %s678_s8, %s908_s8   ;;  %s641_s7 = sphi %s676_s7, %s907_s7   ;;  %s637_s6 = sphi %s674_s6, %s906_s6  }
   0x7   : > { %s29_s14 = sadd.s32 1, %s653_s10  ;;  %s38_s15 = sadd.s32 1, %s645_s8 }
   0x8   : > { %p31_p0 = scmp.ge.s32.totalorder %s29_s14, 2  ;;  %p45_p1 = scmp.ne.s32.totalorder %s645_s8, %s641_s7 }
   0x9   : > { %p46_p2 = scmp.eq.s32.totalorder %s657_s11, 0  ;;  %p51_p3 = scmp.ne.s32.totalorder %s641_s7, %s637_s6 }
   0xa   : > { %s912_s14 = smov (%p31_p0, %s29_s14), 0  ;;  %p52_p5 = scmp.eq.s32.totalorder %s442_s12, 0 }
   0xb   : > { %p715_p4 = por %p46_p2, %p45_p1  ;;  %s33_s17 = ssub.s32 %s653_s10, %s912_s14 }
   0xc   : > { %p77_p6 = scmp.eq.s32.totalorder %s442_s12, 1  ;;  %p36_p7 = scmp.eq.s32.totalorder %s33_s17, 0 }
   0xd   : > { %p721_p8 = por %p52_p5, %p51_p3  ;;  %p83_p10 = scmp.eq.s32.totalorder %s443_s13, 1 }
   0xe   : > { %p725_p9 = por %p77_p6, %p45_p1  ;;  %p445_p12 = scmp.ge.s32.totalorder %s657_s11, 2 }
   0xf   : > { %s730_s20 = scalar_select %p36_p7, %s645_s8, %s38_s15  }
  0x10   : > { %p732_p11 = por %p83_p10, %p51_p3  ;;  %p490_p13 = scmp.lt.s32.totalorder %s657_s11, 2 }
  0x11   : > { %s103_s22 = sand.u32 1, %s645_s8   ;;  %s476_s24 = smul.u32 176, %s653_s10 }
  0x12   : > { %s475_s23 = smul.u32 176, %s103_s22  ;;  %p483_p0 = pnand %p490_p13, %p715_p4 }
  0x13   : > { %s113_s27 = scalar_lea.hbm %s900_s0, %s476_s24  ;;  %p447_p1 = scmp.ge.s32.totalorder %s657_s11, 1 }
  0x14   : > { %s107_s28 = scalar_lea.vmem [#allocation3], %s475_s23  ;;  %s114_s30 = sshll.u32 %s113_s27, 4  ;;  %s115_s30 = int_to_ptr.hbm [resolvable:$true] %s114_s30 }
  0x15   : > { %s116_s29 = sshll.u32 %s107_s28, 4  ;;  %s104_s2 = scalar_lea.sflag [#allocation4], %s103_s22  ;;  %s117_s29 = int_to_ptr.vmem [resolvable:$true] %s116_s29 }
  0x16   : > { %s659_s3 = smov 128   ;;  %s660_s4 = smov 8  }
  0x17   : > { %485 = dma.hbm_to_vmem [thread:$0]  (!%p483_p0), %s115_s30, 2816, %s117_s29, %s104_s2, %s659_s3, %s659_s3, %s660_s4  }
  0x18   : > { %p124_p2 = scmp.lt.s32.totalorder %s657_s11, 3 }
  0x1a   : > { %p125_p3 = pnand %p447_p1, %p124_p2 }
  0x1b   : > { %s748_s5 = sand.u32 (!%p125_p3), 1, %s641_s7  }
  0x1c   : > { %128 = sbr.rel (%p125_p3) target bundleno = 176 (0xb0), region = 24  ;;  %s131_s13 = scalar_lea.sflag (!%p125_p3), [#allocation4], %s748_s5 }
  0x1d   : > { %s477_s12 = smul.u32 (!%p125_p3), 176, %s748_s5 }
  0x1f   : > { %s752_s15 = scalar_lea.vmem (!%p125_p3), [#allocation3], %s477_s12 }
  0x21   : > { %628 = dma.done.wait (%p721_p8), %s131_s13, 2816  }
  0x22   : > { %630 = vsyncadd (%p721_p8), %s131_s13, 4294964480  ;;  %vm154_vm0 = vcmask 126976   ;;  %v661_v0 = vmov 0.0   ;;  %v157_v1 = vld [vmem:[%s752_s15] sm:$0xff]  ;;  %v449_v2 = vld [vmem:[%s752_s15 + $0x10] sm:$0xff]  ;;  %vm231_vm1 = vcmask 130048  }
  0x23   : > { %155 = vst.msk [vmem:[#allocation2] sm:$0x1f] %vm154_vm0, %v661_v0  ;;  %v451_v3 = vld [vmem:[%s752_s15 + $0x20] sm:$0xff]  ;;  %v159_v4 = vmul.f32 0.090683885, %v157_v1  ;;  %v453_v7 = vld [vmem:[%s752_s15 + $0x30] sm:$0xff] }
  0x24   : > { %156 = vst.msk [vmem:[#allocation2 + $0x15] sm:$0x1f] %vm154_vm0, %v661_v0  ;;  %v164_v5 = vmul.f32 0.09081888, %v449_v2  ;;  %v171_v6 = vmul.f32 0.090924025, %v451_v3 }
  0x25   : > { %v455_v8 = vld [vmem:[%s752_s15 + $0x40] sm:$0xff]  ;;  %v178_v10 = vmul.f32 0.09099919, %v453_v7  ;;  %v457_v11 = vld [vmem:[%s752_s15 + $0x50] sm:$0xff]  ;;  %v158_v15 = vld [vmem:[%s752_s15 + $0x8] sm:$0xff]  ;;  %s448_s16 = sshll.u32 %s748_s5, 4 }
  0x26   : > { %v166_v9 = vadd.f32 %v164_v5, %v159_v4  ;;  %v185_v13 = vmul.f32 0.09104433, %v455_v8  ;;  %v459_v14 = vld [vmem:[%s752_s15 + $0x60] sm:$0xff]  ;;  %v192_v17 = vmul.f32 0.09105938, %v457_v11  ;;  %v461_v18 = vld [vmem:[%s752_s15 + $0x70] sm:$0xff] }
  0x27   : > { %v160_v19 = vmul.f32 0.090683885, %v158_v15  ;;  %v450_v20 = vld [vmem:[%s752_s15 + $0x18] sm:$0xff]  ;;  %v452_v21 = vld [vmem:[%s752_s15 + $0x28] sm:$0xff]  ;;  %v199_v24 = vmul.f32 0.09104433, %v459_v14 }
  0x28   : > { %v173_v12 = vadd.f32 %v171_v6, %v166_v9  ;;  %v454_v22 = vld [vmem:[%s752_s15 + $0x38] sm:$0xff]  ;;  %v165_v25 = vmul.f32 0.09081888, %v450_v20  ;;  %v172_v26 = vmul.f32 0.090924025, %v452_v21  ;;  %v463_v27 = vld [vmem:[%s752_s15 + $0x80] sm:$0xff] }
  0x29   : > { %v456_v28 = vld [vmem:[%s752_s15 + $0x48] sm:$0xff]  ;;  %v206_v30 = vmul.f32 0.09099919, %v461_v18  ;;  %v179_v32 = vmul.f32 0.09099919, %v454_v22  ;;  %v465_v33 = vld [vmem:[%s752_s15 + $0x90] sm:$0xff] }
  0x2a   : > { %v180_v16 = vadd.f32 %v178_v10, %v173_v12  ;;  %v167_v31 = vadd.f32 %v165_v25, %v160_v19  ;;  %v458_v34 = vld [vmem:[%s752_s15 + $0x58] sm:$0xff]  ;;  %v213_v36 = vmul.f32 0.090924025, %v463_v27  ;;  %v186_v38 = vmul.f32 0.09104433, %v456_v28  ;;  %v467_v39 = vld [vmem:[%s752_s15 + $0xa0] sm:$0xff] }
  0x2b   : > { %v460_v40 = vld [vmem:[%s752_s15 + $0x68] sm:$0xff]  ;;  %v220_v42 = vmul.f32 0.09081888, %v465_v33  ;;  %v193_v44 = vmul.f32 0.09105938, %v458_v34  ;;  %v462_v45 = vld [vmem:[%s752_s15 + $0x78] sm:$0xff] }
  0x2c   : > { %v187_v23 = vadd.f32 %v185_v13, %v180_v16  ;;  %v174_v37 = vadd.f32 %v172_v26, %v167_v31  ;;  %v227_v47 = vmul.f32 0.090683885, %v467_v39  ;;  %v200_v49 = vmul.f32 0.09104433, %v460_v40  ;;  %v464_v50 = vld [vmem:[%s752_s15 + $0x88] sm:$0xff]  ;;  %v466_v54 = vld [vmem:[%s752_s15 + $0x98] sm:$0xff] }
  0x2d   : > { %v207_v53 = vmul.f32 0.09099919, %v462_v45  ;;  %v214_v57 = vmul.f32 0.090924025, %v464_v50  ;;  %v468_v58 = vld [vmem:[%s752_s15 + $0xa8] sm:$0xff]  ;;  %s783_s17 = scalar_lea.vmem [#allocation6], %s448_s16 }
  0x2e   : > { %v194_v29 = vadd.f32 %v192_v17, %v187_v23  ;;  %v181_v43 = vadd.f32 %v179_v32, %v174_v37  ;;  %v221_v60 = vmul.f32 0.09081888, %v466_v54  ;;  %v228_v62 = vmul.f32 0.090683885, %v468_v58  ;;  %s474_s18 = sshll.u32 %s649_s9, 4  ;;  %s354_s25 = sshll.u32 %s783_s17, 4  ;;  %s355_s25 = int_to_ptr.vmem [resolvable:$true] %s354_s25 }
  0x2f   : > { %s353_s24 = scalar_lea.hbm %s901_s1, %s474_s18  ;;  %s341_s9 = scalar_lea.sflag [#allocation5], %s748_s5 }
  0x30   : > { %v201_v35 = vadd.f32 %v199_v24, %v194_v29  ;;  %v188_v48 = vadd.f32 %v186_v38, %v181_v43  ;;  %s356_s26 = sshll.u32 %s353_s24, 4  ;;  %s595_s2 = scalar_lea.hbm %s901_s1, 32  ;;  %s357_s26 = int_to_ptr.hbm [resolvable:$true] %s356_s26 }
  0x31   : > { %s589_s27 = sshra.s32 %s357_s26, 4  ;;  %s590_s27 = int_to_ptr.hbm [resolvable:$true] %s589_s27 }
  0x32   : > { %v208_v41 = vadd.f32 %v206_v30, %v201_v35  ;;  %v195_v52 = vadd.f32 %v193_v44, %v188_v48  ;;  %s591_s28 = scalar_lea.hbm %s590_s27, 16  ;;  %p596_p7 = scmp.lt.s32.totalorder %s590_s27, %s901_s1 }
  0x33   : > { %p592_p4 = scmp.ne.s32.totalorder %s590_s27, %s591_s28  ;;  %p597_p8 = scmp.lt.s32.totalorder %s595_s2, %s591_s28 }
  0x34   : > { %v215_v46 = vadd.f32 %v213_v36, %v208_v41  ;;  %v202_v56 = vadd.f32 %v200_v49, %v195_v52 }
  0x35   : > { %p593_p5 = pnand %p592_p4, %p725_p9  ;;  %p598_p10 = por %p597_p8, %p596_p7 }
  0x36   : > { %v222_v51 = vadd.f32 %v220_v42, %v215_v46  ;;  %v209_v59 = vadd.f32 %v207_v53, %v202_v56 }
  0x37   : > { %p594_p6 = pneg %p593_p5 }
  0x38   : > { %v229_v55 = vadd.f32 %v227_v47, %v222_v51  ;;  %v216_v61 = vadd.f32 %v214_v57, %v209_v59 }
  0x39   : > { %p599_p13 = pnand %p598_p10, %p594_p6 }
  0x3a   : > { %232 = vst.msk [vmem:[#allocation2 + $0x5] sm:$0xff] %vm231_vm1, %v229_v55  ;;  %v223_v63 = vadd.f32 %v221_v60, %v216_v61 }
  0x3c   : > { %v230_v0 = vadd.f32 %v228_v62, %v223_v63 }
  0x3e   : > { %233 = vst.msk [vmem:[#allocation2 + $0xd] sm:$0xff] %vm231_vm1, %v230_v0 }
  0x41   : > { %v234_v1 = vld [vmem:[#allocation2] sm:$0xff] }
  0x42   : > { %v236_v2 = vmul.f32 0.090683885, %v234_v1  ;;  %v242_v3 = vld [vmem:[#allocation2 + $0x1] sm:$0xff] }
  0x43   : > { %v244_v6 = vmul.f32 0.09081888, %v242_v3  ;;  %v252_v10 = vld [vmem:[#allocation2 + $0x2] sm:$0xff] }
  0x44   : > { %238 = vst.msk [vmem:[%s783_s17] sm:$0xff] %vm231_vm1, %v236_v2  ;;  %v254_v14 = vmul.f32 0.090924025, %v252_v10  ;;  %v262_v18 = vld [vmem:[#allocation2 + $0x3] sm:$0xff] }
  0x45   : > { %v787_v4 = vld [vmem:[#allocation2 + $0x8] sm:$0xff]  ;;  %v264_v22 = vmul.f32 0.09099919, %v262_v18  ;;  %v313_v0 = vld [vmem:[#allocation2 + $0x10] sm:$0xff] }
  0x46   : > { %v237_v5 = vmul.f32 0.090683885, %v787_v4  ;;  %v243_v9 = vld [vmem:[#allocation2 + $0x9] sm:$0xff]  ;;  %v314_v61 = vmul.f32 0.090924025, %v787_v4 }
  0x47   : > { %v795_v11 = vmul.f32 0.09081888, %v243_v9  ;;  %v804_v17 = vld [vmem:[#allocation2 + $0xa] sm:$0xff]  ;;  %v315_v1 = vmul.f32 0.090924025, %v313_v0 }
  0x48   : > { %239 = vst.msk [vmem:[%s783_s17 + $0x8] sm:$0xff] %vm231_vm1, %v237_v5  ;;  %v255_v19 = vmul.f32 0.090924025, %v804_v17  ;;  %v263_v25 = vld [vmem:[#allocation2 + $0xb] sm:$0xff]  ;;  %v334_v10 = vmul.f32 0.090683885, %v804_v17 }
  0x49   : > { %v272_v26 = vld [vmem:[#allocation2 + $0x4] sm:$0xff]  ;;  %v265_v27 = vmul.f32 0.09099919, %v263_v25  ;;  %v273_v33 = vld [vmem:[#allocation2 + $0xc] sm:$0xff] }
  0x4a   : > { %v274_v30 = vmul.f32 0.09104433, %v272_v26  ;;  %v282_v34 = vld [vmem:[#allocation2 + $0x5] sm:$0xff]  ;;  %v275_v35 = vmul.f32 0.09104433, %v273_v33  ;;  %v283_v41 = vld [vmem:[#allocation2 + $0xd] sm:$0xff] }
  0x4b   : > { %v240_v7 = vld [vmem:[%s783_s17] sm:$0xff]  ;;  %v284_v38 = vmul.f32 0.09105938, %v282_v34  ;;  %v285_v43 = vmul.f32 0.09105938, %v283_v41 }
  0x4c   : > { %v246_v8 = vadd.f32 %v244_v6, %v240_v7  ;;  %v292_v42 = vld [vmem:[#allocation2 + $0x6] sm:$0xff]  ;;  %v293_v49 = vld [vmem:[#allocation2 + $0xe] sm:$0xff] }
  0x4d   : > { %v294_v46 = vmul.f32 0.09104433, %v292_v42  ;;  %v302_v50 = vld [vmem:[#allocation2 + $0x7] sm:$0xff]  ;;  %v295_v51 = vmul.f32 0.09104433, %v293_v49  ;;  %v303_v57 = vld [vmem:[#allocation2 + $0xf] sm:$0xff] }
  0x4e   : > { %248 = vst.msk [vmem:[%s783_s17] sm:$0xff] %vm231_vm1, %v246_v8  ;;  %v304_v54 = vmul.f32 0.09099919, %v302_v50  ;;  %v305_v58 = vmul.f32 0.09099919, %v303_v57  ;;  %v323_v6 = vld [vmem:[#allocation2 + $0x11] sm:$0xff] }
  0x4f   : > { %v241_v12 = vld [vmem:[%s783_s17 + $0x8] sm:$0xff]  ;;  %v325_v7 = vmul.f32 0.09081888, %v323_v6 }
  0x50   : > { %v247_v13 = vadd.f32 %v795_v11, %v241_v12 }
  0x52   : > { %249 = vst.msk [vmem:[%s783_s17 + $0x8] sm:$0xff] %vm231_vm1, %v247_v13 }
  0x55   : > { %v250_v15 = vld [vmem:[%s783_s17] sm:$0xff] }
  0x56   : > { %v256_v16 = vadd.f32 %v254_v14, %v250_v15 }
  0x58   : > { %258 = vst.msk [vmem:[%s783_s17] sm:$0xff] %vm231_vm1, %v256_v16 }
  0x59   : > { %v251_v20 = vld [vmem:[%s783_s17 + $0x8] sm:$0xff] }
  0x5a   : > { %v257_v21 = vadd.f32 %v255_v19, %v251_v20 }
  0x5c   : > { %259 = vst.msk [vmem:[%s783_s17 + $0x8] sm:$0xff] %vm231_vm1, %v257_v21 }
  0x5f   : > { %v260_v23 = vld [vmem:[%s783_s17] sm:$0xff] }
  0x60   : > { %v266_v24 = vadd.f32 %v264_v22, %v260_v23 }
  0x62   : > { %268 = vst.msk [vmem:[%s783_s17] sm:$0xff] %vm231_vm1, %v266_v24 }
  0x63   : > { %v261_v28 = vld [vmem:[%s783_s17 + $0x8] sm:$0xff] }
  0x64   : > { %v267_v29 = vadd.f32 %v265_v27, %v261_v28 }
  0x66   : > { %269 = vst.msk [vmem:[%s783_s17 + $0x8] sm:$0xff] %vm231_vm1, %v267_v29 }
  0x69   : > { %v270_v31 = vld [vmem:[%s783_s17] sm:$0xff] }
  0x6a   : > { %v276_v32 = vadd.f32 %v274_v30, %v270_v31 }
  0x6c   : > { %278 = vst.msk [vmem:[%s783_s17] sm:$0xff] %vm231_vm1, %v276_v32 }
  0x6d   : > { %v271_v36 = vld [vmem:[%s783_s17 + $0x8] sm:$0xff] }
  0x6e   : > { %v277_v37 = vadd.f32 %v275_v35, %v271_v36 }
  0x70   : > { %279 = vst.msk [vmem:[%s783_s17 + $0x8] sm:$0xff] %vm231_vm1, %v277_v37 }
  0x73   : > { %v280_v39 = vld [vmem:[%s783_s17] sm:$0xff] }
  0x74   : > { %v286_v40 = vadd.f32 %v284_v38, %v280_v39 }
  0x76   : > { %288 = vst.msk [vmem:[%s783_s17] sm:$0xff] %vm231_vm1, %v286_v40 }
  0x77   : > { %v281_v44 = vld [vmem:[%s783_s17 + $0x8] sm:$0xff] }
  0x78   : > { %v287_v45 = vadd.f32 %v285_v43, %v281_v44 }
  0x7a   : > { %289 = vst.msk [vmem:[%s783_s17 + $0x8] sm:$0xff] %vm231_vm1, %v287_v45 }
  0x7d   : > { %v290_v47 = vld [vmem:[%s783_s17] sm:$0xff] }
  0x7e   : > { %v296_v48 = vadd.f32 %v294_v46, %v290_v47 }
  0x80   : > { %298 = vst.msk [vmem:[%s783_s17] sm:$0xff] %vm231_vm1, %v296_v48 }
  0x81   : > { %v291_v52 = vld [vmem:[%s783_s17 + $0x8] sm:$0xff] }
  0x82   : > { %v297_v53 = vadd.f32 %v295_v51, %v291_v52 }
  0x84   : > { %299 = vst.msk [vmem:[%s783_s17 + $0x8] sm:$0xff] %vm231_vm1, %v297_v53 }
  0x87   : > { %v300_v55 = vld [vmem:[%s783_s17] sm:$0xff] }
  0x88   : > { %v306_v56 = vadd.f32 %v304_v54, %v300_v55 }
  0x8a   : > { %308 = vst.msk [vmem:[%s783_s17] sm:$0xff] %vm231_vm1, %v306_v56 }
  0x8b   : > { %v301_v59 = vld [vmem:[%s783_s17 + $0x8] sm:$0xff] }
  0x8c   : > { %v307_v60 = vadd.f32 %v305_v58, %v301_v59 }
  0x8e   : > { %309 = vst.msk [vmem:[%s783_s17 + $0x8] sm:$0xff] %vm231_vm1, %v307_v60 }
  0x91   : > { %v310_v62 = vld [vmem:[%s783_s17] sm:$0xff] }
  0x92   : > { %v316_v63 = vadd.f32 %v314_v61, %v310_v62 }
  0x94   : > { %318 = vst.msk [vmem:[%s783_s17] sm:$0xff] %vm231_vm1, %v316_v63 }
  0x95   : > { %v311_v2 = vld [vmem:[%s783_s17 + $0x8] sm:$0xff] }
  0x96   : > { %v317_v3 = vadd.f32 %v315_v1, %v311_v2 }
  0x98   : > { %319 = vst.msk [vmem:[%s783_s17 + $0x8] sm:$0xff] %vm231_vm1, %v317_v3 }
  0x9b   : > { %v320_v5 = vld [vmem:[%s783_s17] sm:$0xff] }
  0x9c   : > { %v326_v4 = vadd.f32 %v320_v5, %v795_v11  ;;  %v333_v11 = vld [vmem:[#allocation2 + $0x12] sm:$0xff] }
  0x9d   : > { %v335_v14 = vmul.f32 0.090683885, %v333_v11 }
  0x9e   : > { %328 = vst.msk [vmem:[%s783_s17] sm:$0xff] %vm231_vm1, %v326_v4 }
  0x9f   : > { %v321_v8 = vld [vmem:[%s783_s17 + $0x8] sm:$0xff] }
  0xa0   : > { %v327_v9 = vadd.f32 %v325_v7, %v321_v8 }
  0xa2   : > { %329 = vst.msk [vmem:[%s783_s17 + $0x8] sm:$0xff] %vm231_vm1, %v327_v9 }
  0xa5   : > { %v330_v12 = vld [vmem:[%s783_s17] sm:$0xff] }
  0xa6   : > { %v336_v13 = vadd.f32 %v334_v10, %v330_v12 }
  0xa8   : > { %338 = vst.msk [vmem:[%s783_s17] sm:$0xff] %vm231_vm1, %v336_v13 }
  0xa9   : > { %v331_v15 = vld [vmem:[%s783_s17 + $0x8] sm:$0xff] }
  0xaa   : > { %v337_v16 = vadd.f32 %v335_v14, %v331_v15 }
  0xac   : > { %339 = vst.msk [vmem:[%s783_s17 + $0x8] sm:$0xff] %vm231_vm1, %v337_v16 }
  0xad   : > { %602 = shalt.err (!%p599_p13)
}
  0xae   : > { %s662_s5 = smov 128   ;;  %s663_s12 = smov 8  }
  0xaf   : > { %480 = dma.vmem_to_hbm [thread:$0]  (%p725_p9), %s355_s25, 256, %s357_s26, %s341_s9, %s662_s5, %s662_s5, %s663_s12  }
  0xb0 PF: > { %s371_s13 = sand.u32 1, %s637_s6   ;;  %p487_p0 = pnand %p445_p12, %p732_p11 }
  0xb1   : > { %s372_s15 = scalar_lea.sflag [#allocation5], %s371_s13 }
  0xb2   : > { %p488_p1 = pneg %p487_p0 }
  0xb4   : > { %632 = dma.done.wait (%p488_p1), %s372_s15, 256  }
  0xb5   : > { %634 = vsyncadd (%p488_p1), %s372_s15, 4294967040  ;;  %s17_s11 = sadd.s32 1, %s657_s11   ;;  %s906_s6 = smov %s641_s7 }
  0xb6   : > { %p14_p2 = scmp.ge.s32.totalorder %s17_s11, 4   ;;  %s907_s7 = smov %s645_s8 }
  0xb7   : > { %s908_s8 = smov %s730_s20  ;;  %s909_s9 = smov %s653_s10 }
  0xb8   : > { %s910_s10 = smov %s912_s14  ;;  %16 = sbr.rel (!%p14_p2) target bundleno = 6 (0x6), region = 79 }
  0xbd   :  { %378 = vsyncpa [#allocation4], 1 }
  0xbe   :  { %380 = vsyncpa [#allocation4 + $0x1], 1 }
  0xbf   :  { %381 = vsyncpa [#allocation5], 1 }
  0xc0   :  { %383 = vsyncpa [#allocation5 + $0x1], 1 }

</bundles_post_ra>
